<compile_context>
chip_gen: v5e
topology: v5e:2x2
jax: 0.10.0
libtpu: 0.0.40
codegen_flags: <defaults>
</compile_context>

<pallas_src>
import functools

import jax
import jax.numpy as jnp
from jax.experimental import pallas as pl
from jax.experimental.pallas import tpu as pltpu


def _vmem_capacity_bytes():
    """Per-TensorCore VMEM capacity; conservative (v7x) fallback if unqueryable."""
    try:
        cap = getattr(pltpu.get_tpu_info(), "vmem_capacity_bytes", None)
        if cap:
            return int(cap)
    except Exception:
        pass
    return 64 << 20


def _fcomb_kernel(num_layers, compute_dtype, fm_ref, zc_ref, *refs):
    """Fused conv/ReLU chain in the transposed (channels x voxels) formulation.

    fm_ref : (1, C, tile_s)   feature-map tile, voxels on lanes
    zc_ref : (1, nf0, 1)      per-batch constant  z @ W0_z + b0  (f32)
    refs   : (W0_feat^T,  W1^T, b1, ..., W_{L-1}^T, b_{L-1},  o_ref)
             weights stored as (cout, cin) in compute_dtype, biases as (cout, 1) f32
    o_ref  : (1, Cout, tile_s)
    """
    o_ref = refs[-1]
    params = refs[:-1]

    # Cast dot inputs only; accumulate in f32 on the MXU.
    x = fm_ref[0].astype(compute_dtype)                    # (C, tile_s)
    w0 = params[0][...]                                    # (nf0, C), compute_dtype
    zc = zc_ref[0]                                         # (nf0, 1), f32

    # layer 0: conv (+ folded z contribution and bias) + ReLU, all elementwise in f32
    h = jnp.dot(w0, x, preferred_element_type=jnp.float32) + zc
    h = jnp.maximum(h, 0.0)

    idx = 1
    for l in range(1, num_layers):
        w = params[idx][...]                               # (cout, cin), compute_dtype
        b = params[idx + 1][...]                           # (cout, 1), f32
        idx += 2
        h = jnp.dot(w, h.astype(compute_dtype),
                    preferred_element_type=jnp.float32) + b
        if l < num_layers - 1:
            h = jnp.maximum(h, 0.0)                        # ReLU on all but last layer

    o_ref[0] = h.astype(o_ref.dtype)


def prepare_fcomb_params(weights, biases, num_feature_channels,
                         compute_dtype=jnp.bfloat16):
    """One-time parameter prep, hoisted out of the hot forward path.

    weights[l]: (cin_l, cout_l), biases[l]: (1, cout_l)  (Conv3d 1x1x1 as matmul).
    Splits the first conv into feature / latent parts, stores all weights
    pre-transposed as (cout, cin) in the MXU compute dtype; biases stay f32.
    """
    C = num_feature_channels
    w0 = jnp.asarray(weights[0])
    return {
        "w0_feat_t": jnp.transpose(w0[:C]).astype(compute_dtype),      # (nf0, C)
        "w0_z": jnp.asarray(w0[C:], dtype=jnp.float32),                # (latent, nf0)
        "b0": jnp.asarray(biases[0], dtype=jnp.float32),               # (1, nf0)
        "layers": tuple(
            (jnp.transpose(jnp.asarray(w)).astype(compute_dtype),      # (cout, cin)
             jnp.asarray(b, dtype=jnp.float32).reshape(-1, 1))         # (cout, 1)
            for w, b in zip(weights[1:], biases[1:])
        ),
    }


def fcomb_forward(feature_map, z, params, *, tile_s=8192):
    """feature_map: (B, C, D, H, W) NCDHW, z: (B, latent_dim), params from
    prepare_fcomb_params. Returns (B, num_classes, D, H, W)."""
    B, C, D, H, W = feature_map.shape
    S = D * H * W

    w0_feat_t = params["w0_feat_t"]
    w0_z = params["w0_z"]
    b0 = params["b0"]
    layers = params["layers"]
    assert len(layers) >= 1, "Fcomb has at least first conv + last_layer"
    assert w0_feat_t.shape[1] == C

    compute_dtype = w0_feat_t.dtype
    nf0 = w0_feat_t.shape[0]
    num_layers = 1 + len(layers)
    Cout = layers[-1][0].shape[0]

    # ---- generation-aware, lane-dense voxel tile ------------------------------
    s_pad128 = pl.cdiv(S, 128) * 128
    fm_isz = feature_map.dtype.itemsize
    out_isz = fm_isz
    cd_isz = compute_dtype.itemsize
    inter_c = max(C, nf0, Cout)
    # per-lane VMEM bytes: double-buffered fm in + double-buffered out + intermediates
    per_lane = 2 * C * fm_isz + 2 * Cout * out_isz + inter_c * (4 + cd_isz) * 2
    vmem_cap = _vmem_capacity_bytes()
    max_tile = max(128, ((vmem_cap // 2) // per_lane) // 128 * 128)
    tile_s = min(tile_s, s_pad128, max_tile)
    if B == 1 and s_pad128 >= 256:
        # keep >= 2 voxel-axis steps so both v7x TensorCores get work
        tile_s = min(tile_s, max(128, ((s_pad128 // 2) // 128) * 128))
    tile_s = max(128, (tile_s // 128) * 128)

    # native NCDHW layout: (B, C, S) is a free reshape — no transpose / pad glue
    fm = feature_map.reshape(B, C, S)

    # fold the tiled-z concat of the first conv into a per-batch constant (tiny GEMM)
    zc = (z.astype(jnp.float32) @ w0_z + b0)[:, :, None]               # (B, nf0, 1)

    args = [fm, zc, w0_feat_t]
    in_specs = [
        pl.BlockSpec((1, C, tile_s), lambda b, t: (b, 0, t)),
        pl.BlockSpec((1, nf0, 1), lambda b, t: (b, 0, 0)),
        pl.BlockSpec(w0_feat_t.shape, lambda b, t: (0, 0)),
    ]
    for (wt, bcol) in layers:
        args += [wt, bcol]
        in_specs += [
            pl.BlockSpec(wt.shape, lambda b, t: (0, 0)),
            pl.BlockSpec(bcol.shape, lambda b, t: (0, 0)),
        ]

    # ragged last tile: Pallas pads OOB reads and drops OOB writes — no jnp.pad/slice
    grid = (B, pl.cdiv(S, tile_s))
    vmem_limit = int(min((vmem_cap * 3) // 4,
                         max(32 << 20, per_lane * tile_s + (8 << 20))))

    out = pl.pallas_call(
        functools.partial(_fcomb_kernel, num_layers, compute_dtype),
        out_shape=jax.ShapeDtypeStruct((B, Cout, S), feature_map.dtype),
        grid_spec=pltpu.PrefetchScalarGridSpec(
            num_scalar_prefetch=0,
            grid=grid,
            in_specs=in_specs,
            out_specs=pl.BlockSpec((1, Cout, tile_s), lambda b, t: (b, 0, t)),
        ),
        compiler_params=pltpu.CompilerParams(
            dimension_semantics=("parallel", "parallel"),
            vmem_limit_bytes=vmem_limit,
        ),
    )(*args)

    return out.reshape(B, Cout, D, H, W)   # already NCDHW — no transpose pass


def make_fcomb_params(key, num_filters, latent_dim, num_classes, no_convs_fcomb):
    """Deterministic synthetic parameters matching Fcomb.__init__ shapes.

    Conv weights are stored as (Cin, Cout); biases as (1, Cout).
    """
    nf0 = num_filters[0]
    dims = [(nf0 + latent_dim, nf0)]                      # first conv
    dims += [(nf0, nf0)] * (no_convs_fcomb - 2)           # middle convs
    dims += [(nf0, num_classes)]                          # last_layer

    weights, biases = [], []
    for (cin, cout) in dims:
        key, kw, kb = jax.random.split(key, 3)
        scale = (2.0 / cin) ** 0.5  # kaiming-like (init_weights), synthetic
        weights.append(scale * jax.random.normal(kw, (cin, cout), jnp.float32))
        biases.append(0.01 * jax.random.normal(kb, (1, cout), jnp.float32))
    return weights, biases


def fcomb_reference(feature_map, z, weights, biases):
    """Pure-JAX reference of the PyTorch forward pass (for correctness checks)."""
    B, C, D, H, W = feature_map.shape
    latent = z.shape[1]
    zt = jnp.broadcast_to(z[:, :, None, None, None], (B, latent, D, H, W))
    x = jnp.concatenate([feature_map, zt], axis=1)            # (B, Cin, D, H, W)
    h = jnp.transpose(x, (0, 2, 3, 4, 1))                      # channels-last
    L = len(weights)
    for l in range(L):
        h = h @ weights[l] + biases[l][0]
        if l < L - 1:
            h = jnp.maximum(h, 0.0)
    return jnp.transpose(h, (0, 4, 1, 2, 3))


if __name__ == "__main__":
    # Small shapes consistent with the module's forward:
    #   feature_map: (B, num_filters[0], D, H, W), z: (B, latent_dim)
    num_filters = [32, 64, 128, 192]
    latent_dim = 6
    num_classes = 2
    no_convs_fcomb = 3

    B, D, H, W = 2, 8, 8, 8

    key = jax.random.PRNGKey(0)
    kf, kz, kp = jax.random.split(key, 3)
    feature_map = jax.random.normal(kf, (B, num_filters[0], D, H, W), jnp.float32)
    z = jax.random.normal(kz, (B, latent_dim), jnp.float32)

    weights, biases = make_fcomb_params(
        kp, num_filters, latent_dim, num_classes, no_convs_fcomb
    )
    ref = fcomb_reference(feature_map, z, weights, biases)

    # 1) f32 compute path: tight correctness check of the kernel structure.
    params_f32 = prepare_fcomb_params(weights, biases, num_filters[0],
                                      compute_dtype=jnp.float32)
    fwd = jax.jit(functools.partial(fcomb_forward, tile_s=8192))
    out_f32 = jax.block_until_ready(fwd(feature_map, z, params_f32))
    assert out_f32.shape == (B, num_classes, D, H, W), out_f32.shape
    assert jnp.allclose(out_f32, ref, atol=2e-4, rtol=2e-4), "f32 mismatch vs reference"

    # 2) bf16 dot-input path (perf default on v5e/v6e/v7x): looser tolerance
    #    (expected precision change, not a bug).
    params_bf16 = prepare_fcomb_params(weights, biases, num_filters[0],
                                       compute_dtype=jnp.bfloat16)
    out_bf16 = jax.block_until_ready(fwd(feature_map, z, params_bf16))
    assert out_bf16.shape == (B, num_classes, D, H, W), out_bf16.shape
    assert jnp.allclose(out_bf16, ref, atol=5e-2, rtol=5e-2), "bf16 mismatch vs reference"

    # 3) Ragged-S check: S not a multiple of tile_s exercises the partial last
    #    tile (OOB reads padded, OOB writes dropped) with no pad/slice round-trip.
    D2, H2, W2 = 5, 7, 9   # S = 315
    fm2 = jax.random.normal(kf, (1, num_filters[0], D2, H2, W2), jnp.float32)
    z2 = jax.random.normal(kz, (1, latent_dim), jnp.float32)
    out2 = jax.block_until_ready(fcomb_forward(fm2, z2, params_bf16, tile_s=128))
    ref2 = fcomb_reference(fm2, z2, weights, biases)
    assert out2.shape == (1, num_classes, D2, H2, W2), out2.shape
    assert jnp.allclose(out2, ref2, atol=5e-2, rtol=5e-2), "ragged-tile mismatch"

    print("KERNEL_OK")
</pallas_src>

<mosaic_0001>
module attributes {stable_mosaic.version = 11 : i64} {
  func.func @_fcomb_kernel(%arg0: i32, %arg1: i32, %arg2: memref<1x32x512xf32, #tpu.memory_space<vmem>>, %arg3: memref<1x32x1xf32, #tpu.memory_space<vmem>>, %arg4: memref<32x32xf32, #tpu.memory_space<vmem>>, %arg5: memref<32x32xf32, #tpu.memory_space<vmem>>, %arg6: memref<32x1xf32, #tpu.memory_space<vmem>>, %arg7: memref<2x32xf32, #tpu.memory_space<vmem>>, %arg8: memref<2x1xf32, #tpu.memory_space<vmem>>, %arg9: memref<1x2x512xf32, #tpu.memory_space<vmem>>) attributes {dimension_semantics = [#tpu.dimension_semantics<parallel>, #tpu.dimension_semantics<parallel>], iteration_bounds = array<i64: 2, 1>, scalar_prefetch = 0 : i64, scratch_operands = 0 : i64, tpu.core_type = #tpu.core_type<tc>, window_params = [{transform_indices = @transform_0, window_bounds = array<i64: 1, 32, 512>}, {transform_indices = @transform_1, window_bounds = array<i64: 1, 32, 1>}, {pipeline_mode = #tpu.pipeline_mode<synchronous>, transform_indices = @transform_2, window_bounds = array<i64: 32, 32>}, {pipeline_mode = #tpu.pipeline_mode<synchronous>, transform_indices = @transform_3, window_bounds = array<i64: 32, 32>}, {pipeline_mode = #tpu.pipeline_mode<synchronous>, transform_indices = @transform_4, window_bounds = array<i64: 32, 1>}, {pipeline_mode = #tpu.pipeline_mode<synchronous>, transform_indices = @transform_5, window_bounds = array<i64: 2, 32>}, {pipeline_mode = #tpu.pipeline_mode<synchronous>, transform_indices = @transform_6, window_bounds = array<i64: 2, 1>}, {transform_indices = @transform_7, window_bounds = array<i64: 1, 2, 512>}]} {
    %c0 = arith.constant 0 : index
    %c0_0 = arith.constant 0 : index
    %c0_1 = arith.constant 0 : index
    %0 = vector.load %arg2[%c0, %c0_0, %c0_1] : memref<1x32x512xf32, #tpu.memory_space<vmem>>, vector<1x32x512xf32>
    %1 = vector.shape_cast %0 : vector<1x32x512xf32> to vector<32x512xf32>
    %c0_2 = arith.constant 0 : index
    %c0_3 = arith.constant 0 : index
    %2 = vector.load %arg4[%c0_2, %c0_3] : memref<32x32xf32, #tpu.memory_space<vmem>>, vector<32x32xf32>
    %c0_4 = arith.constant 0 : index
    %c0_5 = arith.constant 0 : index
    %c0_6 = arith.constant 0 : index
    %3 = vector.load %arg3[%c0_4, %c0_5, %c0_6] : memref<1x32x1xf32, #tpu.memory_space<vmem>>, vector<1x32x1xf32>
    %4 = vector.shape_cast %3 : vector<1x32x1xf32> to vector<32x1xf32>
    %cst = arith.constant dense<0.000000e+00> : vector<32x512xf32>
    %5 = tpu.matmul %2, %1, %cst {dimension_numbers = #tpu.dot_dimension_numbers<[1], [0], [0], [1], [0, 0, 1, 1], [], []>} : vector<32x32xf32>, vector<32x512xf32>, vector<32x512xf32> -> vector<32x512xf32>
    %6 = vector.broadcast %4 : vector<32x1xf32> to vector<32x512xf32>
    %7 = arith.addf %5, %6 : vector<32x512xf32>
    %cst_7 = arith.constant 0.000000e+00 : f32
    %8 = vector.broadcast %cst_7 : f32 to vector<32x512xf32>
    %9 = arith.maximumf %7, %8 : vector<32x512xf32>
    %c0_8 = arith.constant 0 : index
    %c0_9 = arith.constant 0 : index
    %10 = vector.load %arg5[%c0_8, %c0_9] : memref<32x32xf32, #tpu.memory_space<vmem>>, vector<32x32xf32>
    %c0_10 = arith.constant 0 : index
    %c0_11 = arith.constant 0 : index
    %11 = vector.load %arg6[%c0_10, %c0_11] : memref<32x1xf32, #tpu.memory_space<vmem>>, vector<32x1xf32>
    %cst_12 = arith.constant dense<0.000000e+00> : vector<32x512xf32>
    %12 = tpu.matmul %10, %9, %cst_12 {dimension_numbers = #tpu.dot_dimension_numbers<[1], [0], [0], [1], [0, 0, 1, 1], [], []>} : vector<32x32xf32>, vector<32x512xf32>, vector<32x512xf32> -> vector<32x512xf32>
    %13 = vector.broadcast %11 : vector<32x1xf32> to vector<32x512xf32>
    %14 = arith.addf %12, %13 : vector<32x512xf32>
    %cst_13 = arith.constant 0.000000e+00 : f32
    %15 = vector.broadcast %cst_13 : f32 to vector<32x512xf32>
    %16 = arith.maximumf %14, %15 : vector<32x512xf32>
    %c0_14 = arith.constant 0 : index
    %c0_15 = arith.constant 0 : index
    %17 = vector.load %arg7[%c0_14, %c0_15] : memref<2x32xf32, #tpu.memory_space<vmem>>, vector<2x32xf32>
    %c0_16 = arith.constant 0 : index
    %c0_17 = arith.constant 0 : index
    %18 = vector.load %arg8[%c0_16, %c0_17] : memref<2x1xf32, #tpu.memory_space<vmem>>, vector<2x1xf32>
    %cst_18 = arith.constant dense<0.000000e+00> : vector<2x512xf32>
    %19 = tpu.matmul %17, %16, %cst_18 {dimension_numbers = #tpu.dot_dimension_numbers<[1], [0], [0], [1], [0, 0, 1, 1], [], []>} : vector<2x32xf32>, vector<32x512xf32>, vector<2x512xf32> -> vector<2x512xf32>
    %20 = vector.broadcast %18 : vector<2x1xf32> to vector<2x512xf32>
    %21 = arith.addf %19, %20 : vector<2x512xf32>
    %c0_19 = arith.constant 0 : index
    %c0_20 = arith.constant 0 : index
    %c0_21 = arith.constant 0 : index
    %22 = vector.load %arg9[%c0_19, %c0_20, %c0_21] : memref<1x2x512xf32, #tpu.memory_space<vmem>>, vector<1x2x512xf32>
    %23 = vector.shape_cast %22 : vector<1x2x512xf32> to vector<2x512xf32>
    %24 = vector.shape_cast %21 : vector<2x512xf32> to vector<1x2x512xf32>
    tpu.vector_store %arg9[%c0_19, %c0_20, %c0_21], %24 {strides = array<i32>} : memref<1x2x512xf32, #tpu.memory_space<vmem>>, vector<1x2x512xf32>,
    return
  }
  func.func @transform_0(%arg0: i32, %arg1: i32) -> (i32, i32, i32) {
    %c0_i32 = arith.constant 0 : i32
    %c0_i32_0 = arith.constant 0 : i32
    return %arg0, %c0_i32, %arg1 : i32, i32, i32
  }
  func.func @transform_1(%arg0: i32, %arg1: i32) -> (i32, i32, i32) {
    %c0_i32 = arith.constant 0 : i32
    %c0_i32_0 = arith.constant 0 : i32
    %c0_i32_1 = arith.constant 0 : i32
    return %arg0, %c0_i32, %c0_i32_0 : i32, i32, i32
  }
  func.func @transform_2(%arg0: i32, %arg1: i32) -> (i32, i32) {
    %c0_i32 = arith.constant 0 : i32
    %c0_i32_0 = arith.constant 0 : i32
    %c0_i32_1 = arith.constant 0 : i32
    return %c0_i32, %c0_i32_0 : i32, i32
  }
  func.func @transform_3(%arg0: i32, %arg1: i32) -> (i32, i32) {
    %c0_i32 = arith.constant 0 : i32
    %c0_i32_0 = arith.constant 0 : i32
    %c0_i32_1 = arith.constant 0 : i32
    return %c0_i32, %c0_i32_0 : i32, i32
  }
  func.func @transform_4(%arg0: i32, %arg1: i32) -> (i32, i32) {
    %c0_i32 = arith.constant 0 : i32
    %c0_i32_0 = arith.constant 0 : i32
    %c0_i32_1 = arith.constant 0 : i32
    return %c0_i32, %c0_i32_0 : i32, i32
  }
  func.func @transform_5(%arg0: i32, %arg1: i32) -> (i32, i32) {
    %c0_i32 = arith.constant 0 : i32
    %c0_i32_0 = arith.constant 0 : i32
    %c0_i32_1 = arith.constant 0 : i32
    return %c0_i32, %c0_i32_0 : i32, i32
  }
  func.func @transform_6(%arg0: i32, %arg1: i32) -> (i32, i32) {
    %c0_i32 = arith.constant 0 : i32
    %c0_i32_0 = arith.constant 0 : i32
    %c0_i32_1 = arith.constant 0 : i32
    return %c0_i32, %c0_i32_0 : i32, i32
  }
  func.func @transform_7(%arg0: i32, %arg1: i32) -> (i32, i32, i32) {
    %c0_i32 = arith.constant 0 : i32
    %c0_i32_0 = arith.constant 0 : i32
    return %arg0, %c0_i32, %arg1 : i32, i32, i32
  }
}

</mosaic_0001>

<bundles_post_ra>
// kernel: fcomb_forward.1
= control target key start
LH: loop header
LB: loop body
LE: loop exit
PB: predicated region body
PF: predicated region fallthrough
CT: control target
= control target key end

     0   :  { %s1048_s24 = smov 0   ;;  %s1050_s25 = smov 0   ;;  %s1167_s0 = inlined_call_operand.vmem [shape: f32[2,32,512], index: 0, kind: input, shape index: {}]   ;;  %s1168_s1 = inlined_call_operand.vmem [shape: f32[2,32,1], index: 1, kind: input, shape index: {}]   ;;  %s1169_s2 = inlined_call_operand.vmem [shape: f32[32,32], index: 2, kind: input, shape index: {}]   ;;  %s1170_s3 = inlined_call_operand.vmem [shape: f32[32,32], index: 3, kind: input, shape index: {}]   ;;  %s1171_s4 = inlined_call_operand.vmem [shape: f32[32,1], index: 4, kind: input, shape index: {}]   ;;  %s1172_s5 = inlined_call_operand.vmem [shape: f32[2,32], index: 5, kind: input, shape index: {}]   ;;  %s1173_s6 = inlined_call_operand.vmem [shape: f32[2,1], index: 6, kind: input, shape index: {}]   ;;  %s1174_s7 = inlined_call_operand.vmem [shape: f32[2,2,512], index: 7, kind: output, shape index: {}]  }
   0x1   :  { %s1052_s26 = smov 0  }
   0x2 LB: > { %s29_s27 = sadd.s32 1, %s1001_s25  ;;  %p907_p0 = scmp.ge.s32.totalorder %s1005_s26, 1  ;;  %s1005_s26 = sphi %s1052_s26, %s17_s26   ;;  %s1001_s25 = sphi %s1050_s25, %s1176_s25   ;;  %s997_s24 = sphi %s1048_s24, %s1175_s24  }
   0x3   : > { %p31_p1 = scmp.ge.s32.totalorder %s29_s27, 2  ;;  %p268_p2 = scmp.lt.s32.totalorder %s1005_s26, 3 }
   0x5   : > { %s1178_s27 = smov (%p31_p1, %s29_s27), 0  ;;  %p269_p3 = pnand %p907_p0, %p268_p2 }
   0x6   : > { %p314_p4 = scmp.lt.s32.totalorder (!%p269_p3), %s997_s24, 1 }
   0x7   : > { %272 = sbr.rel (%p269_p3) target bundleno = 498 (0x1f2), region = 48 }
   0xc   : > { %v1007_v0 = vmov 0   ;;  %s1180_s24 = smov (!%p314_p4, %s997_s24), 1  ;;  %v354_v17 = vld [vmem:[%s1169_s2] sm:$0xff]  ;;  %vm382_vm0 = vcmask 261120   ;;  %v355_v20 = vld [vmem:[%s1169_s2 + $0x8] sm:$0xff]  ;;  %v356_v23 = vld [vmem:[%s1169_s2 + $0x10] sm:$0xff] }
   0xd   : > { %981 = vset.pattern.permute.xlu1 %v1007_v0  ;;  %980 = vset.pattern.permute.xlu0 %v1007_v0  ;;  %s952_s28 = sshll.u32 %s1180_s24, 7  ;;  %s953_s9 = sshll.u32 %s1180_s24, 5  ;;  %v532_v24 = vld [vmem:[%s1171_s4 + $0x8] sm:$0xff]  ;;  %v531_v25 = vld [vmem:[%s1171_s4] sm:$0xff]  ;;  %v357_v26 = vld [vmem:[%s1169_s2 + $0x18] sm:$0xff]  ;;  %vm796_vm1 = vcmask 1041408  }
   0xe   : > { %982 = vset.pattern.permute.xlu2 %v1007_v0  ;;  %s321_s8 = scalar_lea.vmem %s1167_s0, %s952_s28  ;;  %s327_s12 = scalar_lea.vmem %s1168_s1, %s953_s9  ;;  %vm798_vm2 = vcmask 1045508   ;;  %vm800_vm3 = vcmask 1043456  }
   0xf   : > { %v350_v1 = vld [vmem:[%s321_s8 + $0x60] sm:$0xff]  ;;  %v351_v2 = vld [vmem:[%s321_s8 + $0x68] sm:$0xff]  ;;  %v352_v3 = vld [vmem:[%s321_s8 + $0x70] sm:$0xff]  ;;  %s954_s22 = sshll.u32 %s1180_s24, 3 }
  0x10   : > { %407 = vmatpush.msra.mxu0 %v350_v1  ;;  %436 = vmatpush.msra.mxu1 %v351_v2  ;;  %v353_v4 = vld [vmem:[%s321_s8 + $0x78] sm:$0xff]  ;;  %v346_v5 = vld [vmem:[%s321_s8 + $0x40] sm:$0xff]  ;;  %v347_v6 = vld [vmem:[%s321_s8 + $0x48] sm:$0xff]  ;;  %s336_s29 = scalar_lea.vmem %s1174_s7, %s954_s22 }
  0x11   : > { %465 = vmatpush.msra.mxu2 %v352_v3  ;;  %494 = vmatpush.msra.mxu3 %v353_v4  ;;  %v348_v7 = vld [vmem:[%s321_s8 + $0x50] sm:$0xff]  ;;  %v349_v8 = vld [vmem:[%s321_s8 + $0x58] sm:$0xff]  ;;  %v342_v9 = vld [vmem:[%s321_s8 + $0x20] sm:$0xff] }
  0x12   : > { %408 = vmatpush.msra.mxu0 %v346_v5  ;;  %437 = vmatpush.msra.mxu1 %v347_v6  ;;  %v343_v10 = vld [vmem:[%s321_s8 + $0x28] sm:$0xff]  ;;  %v344_v11 = vld [vmem:[%s321_s8 + $0x30] sm:$0xff]  ;;  %v345_v12 = vld [vmem:[%s321_s8 + $0x38] sm:$0xff] }
  0x13   : > { %466 = vmatpush.msra.mxu2 %v348_v7  ;;  %495 = vmatpush.msra.mxu3 %v349_v8  ;;  %v338_v13 = vld [vmem:[%s321_s8] sm:$0xff]  ;;  %v339_v14 = vld [vmem:[%s321_s8 + $0x8] sm:$0xff]  ;;  %v340_v15 = vld [vmem:[%s321_s8 + $0x10] sm:$0xff] }
  0x14   : > { %409 = vmatpush.msra.mxu0 %v342_v9  ;;  %438 = vmatpush.msra.mxu1 %v343_v10  ;;  %v341_v16 = vld [vmem:[%s321_s8 + $0x18] sm:$0xff]  ;;  %v359_v18 = vld [vmem:[%s327_s12 + $0x8] sm:$0xff]  ;;  %v358_v21 = vld [vmem:[%s327_s12] sm:$0xff] }
  0x15   : > { %467 = vmatpush.msra.mxu2 %v344_v11  ;;  %496 = vmatpush.msra.mxu3 %v345_v12  ;;  %v361_v19 = vld [vmem:[%s327_s12 + $0x18] sm:$0xff]  ;;  %v360_v22 = vld [vmem:[%s327_s12 + $0x10] sm:$0xff]  ;;  %v527_v7 = vld [vmem:[%s1170_s3] sm:$0xff] }
  0x16   : > { %410 = vmatpush.msra.mxu0 %v338_v13  ;;  %439 = vmatpush.msra.mxu1 %v339_v14  ;;  %v534_v12 = vld [vmem:[%s1171_s4 + $0x18] sm:$0xff] }
  0x17   : > { %468 = vmatpush.msra.mxu2 %v340_v15  ;;  %497 = vmatpush.msra.mxu3 %v341_v16 }
  0x18   : > { %914 = vmatmul.msk.f32.vlgmr.msra.gmra.mxu0 %vm382_vm0, %v354_v17  ;;  %918 = vmatmul.msk.f32.vlgmr.msra.gmra.mxu1 %vm382_vm0, %v354_v17 }
  0x19   : > { %922 = vmatmul.msk.f32.vlgmr.msra.gmra.mxu2 %vm382_vm0, %v354_v17  ;;  %926 = vmatmul.msk.f32.vlgmr.msra.gmra.mxu3 %vm382_vm0, %v354_v17  ;;  %v528_v17 = vld [vmem:[%s1170_s3 + $0x8] sm:$0xff] }
  0x1a   : > { %369 = vperm.xlu1 %981, %v359_v18   ;;  %379 = vperm.xlu0 %980, %v361_v19   ;;  %v533_v18 = vld [vmem:[%s1171_s4 + $0x10] sm:$0xff] }
  0x1b   : > { %552 = vperm.xlu2 %982, %v534_v12   ;;  %v529_v19 = vld [vmem:[%s1170_s3 + $0x10] sm:$0xff] }
  0x20   : > { %915 = vmatmul.msk.f32.gmra.mxu0 %vm382_vm0, %v355_v20  ;;  %919 = vmatmul.msk.f32.gmra.mxu1 %vm382_vm0, %v355_v20 }
  0x21   : > { %923 = vmatmul.msk.f32.gmra.mxu2 %vm382_vm0, %v355_v20  ;;  %927 = vmatmul.msk.f32.gmra.mxu3 %vm382_vm0, %v355_v20  ;;  %v700_v20 = vld [vmem:[%s1173_s6] sm:$0x3] }
  0x22   : > { %364 = vperm.xlu1 %981, %v358_v21   ;;  %374 = vperm.xlu0 %980, %v360_v22   ;;  %v530_v21 = vld [vmem:[%s1170_s3 + $0x18] sm:$0xff] }
  0x23   : > { %547 = vperm.xlu2 %982, %v533_v18  }
  0x28   : > { %916 = vmatmul.msk.f32.gmra.mxu0 %vm382_vm0, %v356_v23  ;;  %920 = vmatmul.msk.f32.gmra.mxu1 %vm382_vm0, %v356_v23 }
  0x29   : > { %924 = vmatmul.msk.f32.gmra.mxu2 %vm382_vm0, %v356_v23  ;;  %928 = vmatmul.msk.f32.gmra.mxu3 %vm382_vm0, %v356_v23 }
  0x2a   : > { %542 = vperm.xlu0 %980, %v532_v24   ;;  %537 = vperm.xlu1 %981, %v531_v25  }
  0x2b   : > { %703 = vperm.xlu2 %982, %v700_v20  }
  0x30   : > { %917 = vmatmul.msk.f32.gmra.mxu0 %vm382_vm0, %v357_v26  ;;  %921 = vmatmul.msk.f32.gmra.mxu1 %vm382_vm0, %v357_v26 }
  0x31   : > { %925 = vmatmul.msk.f32.gmra.mxu2 %vm382_vm0, %v357_v26  ;;  %929 = vmatmul.msk.f32.gmra.mxu3 %vm382_vm0, %v357_v26 }
  0x75   : > { %v553_v26 = vpop.permute.xlu2 %552 }
  0x8c   : > { %v380_v33 = vpop.permute.xlu0 %379  ;;  %v370_v38 = vpop.permute.xlu1 %369 }
  0x94   : > { %v375_v39 = vpop.permute.xlu0 %374  ;;  %v365_v49 = vpop.permute.xlu1 %364 }
  0x95   : > { %v412_v27 = vpop.f32.mrf.mxu0  ;;  %v441_v28 = vpop.f32.mrf.mxu1 }
  0x96   : > { %v413_v53 = vadd.f32 %v412_v27, %v365_v49  ;;  %v442_v57 = vadd.f32 %v441_v28, %v365_v49 }
  0x98   : > { %v511_v1 = vmax.f32 %v413_v53, 0.0  ;;  %v512_v2 = vmax.f32 %v442_v57, 0.0 }
  0x9c   : > { %v470_v29 = vpop.f32.mrf.mxu2  ;;  %v499_v30 = vpop.f32.mrf.mxu3 }
  0x9d   : > { %v415_v31 = vpop.f32.mrf.mxu0  ;;  %v444_v32 = vpop.f32.mrf.mxu1  ;;  %v471_v8 = vadd.f32 %v470_v29, %v365_v49  ;;  %v500_v9 = vadd.f32 %v499_v30, %v365_v49 }
  0x9e   : > { %v416_v42 = vadd.f32 %v415_v31, %v370_v38  ;;  %v445_v50 = vadd.f32 %v444_v32, %v370_v38 }
  0x9f   : > { %v513_v15 = vmax.f32 %v471_v8, 0.0  ;;  %v514_v16 = vmax.f32 %v500_v9, 0.0 }
  0xa0   : > { %v515_v54 = vmax.f32 %v416_v42, 0.0  ;;  %v516_v58 = vmax.f32 %v445_v50, 0.0 }
  0xa4   : > { %v473_v34 = vpop.f32.mrf.mxu2  ;;  %v502_v35 = vpop.f32.mrf.mxu3 }
  0xa5   : > { %v418_v36 = vpop.f32.mrf.mxu0  ;;  %v447_v37 = vpop.f32.mrf.mxu1  ;;  %v474_v3 = vadd.f32 %v473_v34, %v370_v38  ;;  %v503_v4 = vadd.f32 %v502_v35, %v370_v38 }
  0xa6   : > { %v419_v45 = vadd.f32 %v418_v36, %v375_v39  ;;  %v448_v46 = vadd.f32 %v447_v37, %v375_v39  ;;  %v543_v38 = vpop.permute.xlu0 %542 }
  0xa7   : > { %v517_v13 = vmax.f32 %v474_v3, 0.0  ;;  %v518_v14 = vmax.f32 %v503_v4, 0.0 }
  0xa8   : > { %v519_v55 = vmax.f32 %v419_v45, 0.0  ;;  %v520_v56 = vmax.f32 %v448_v46, 0.0 }
  0xac   : > { %v476_v40 = vpop.f32.mrf.mxu2  ;;  %v505_v41 = vpop.f32.mrf.mxu3 }
  0xad   : > { %v421_v43 = vpop.f32.mrf.mxu0  ;;  %v450_v44 = vpop.f32.mrf.mxu1  ;;  %v477_v61 = vadd.f32 %v476_v40, %v375_v39  ;;  %v506_v62 = vadd.f32 %v505_v41, %v375_v39 }
  0xae   : > { %v422_v47 = vadd.f32 %v421_v43, %v380_v33  ;;  %v451_v48 = vadd.f32 %v450_v44, %v380_v33  ;;  %v538_v43 = vpop.permute.xlu1 %537 }
  0xaf   : > { %v521_v10 = vmax.f32 %v477_v61, 0.0  ;;  %v522_v11 = vmax.f32 %v506_v62, 0.0 }
  0xb0   : > { %v523_v51 = vmax.f32 %v422_v47, 0.0  ;;  %v524_v52 = vmax.f32 %v451_v48, 0.0 }
  0xb2   : > { %579 = vmatpush.msrb.mxu0 %v523_v51  ;;  %608 = vmatpush.msrb.mxu1 %v524_v52 }
  0xb4   : > { %v479_v59 = vpop.f32.mrf.mxu2  ;;  %v508_v60 = vpop.f32.mrf.mxu3  ;;  %580 = vmatpush.msrb.mxu0 %v519_v55  ;;  %609 = vmatpush.msrb.mxu1 %v520_v56  ;;  %v699_v56 = vld [vmem:[%s1172_s5] sm:$0x3] }
  0xb5   : > { %v480_v63 = vadd.f32 %v479_v59, %v380_v33  ;;  %v509_v0 = vadd.f32 %v508_v60, %v380_v33  ;;  %v548_v33 = vpop.permute.xlu2 %547 }
  0xb6   : > { %581 = vmatpush.msrb.mxu0 %v515_v54  ;;  %610 = vmatpush.msrb.mxu1 %v516_v58 }
  0xb7   : > { %v525_v5 = vmax.f32 %v480_v63, 0.0  ;;  %v526_v6 = vmax.f32 %v509_v0, 0.0 }
  0xb8   : > { %582 = vmatpush.msrb.mxu0 %v511_v1  ;;  %611 = vmatpush.msrb.mxu1 %v512_v2 }
  0xb9   : > { %637 = vmatpush.msrb.mxu2 %v525_v5  ;;  %666 = vmatpush.msrb.mxu3 %v526_v6 }
  0xba   : > { %930 = vmatmul.msk.f32.vlgmr.msrb.gmra.mxu0 %vm382_vm0, %v527_v7  ;;  %934 = vmatmul.msk.f32.vlgmr.msrb.gmra.mxu1 %vm382_vm0, %v527_v7 }
  0xbb   : > { %638 = vmatpush.msrb.mxu2 %v521_v10  ;;  %667 = vmatpush.msrb.mxu3 %v522_v11 }
  0xbd   : > { %639 = vmatpush.msrb.mxu2 %v517_v13  ;;  %668 = vmatpush.msrb.mxu3 %v518_v14  ;;  %v704_v12 = vpop.permute.xlu2 %703 }
  0xbf   : > { %640 = vmatpush.msrb.mxu2 %v513_v15  ;;  %669 = vmatpush.msrb.mxu3 %v514_v16 }
  0xc0   : > { %938 = vmatmul.msk.f32.vlgmr.msrb.gmra.mxu2 %vm382_vm0, %v527_v7  ;;  %942 = vmatmul.msk.f32.vlgmr.msrb.gmra.mxu3 %vm382_vm0, %v527_v7 }
  0xc2   : > { %931 = vmatmul.msk.f32.gmra.mxu0 %vm382_vm0, %v528_v17  ;;  %935 = vmatmul.msk.f32.gmra.mxu1 %vm382_vm0, %v528_v17 }
  0xc8   : > { %939 = vmatmul.msk.f32.gmra.mxu2 %vm382_vm0, %v528_v17  ;;  %943 = vmatmul.msk.f32.gmra.mxu3 %vm382_vm0, %v528_v17 }
  0xca   : > { %932 = vmatmul.msk.f32.gmra.mxu0 %vm382_vm0, %v529_v19  ;;  %936 = vmatmul.msk.f32.gmra.mxu1 %vm382_vm0, %v529_v19 }
  0xd0   : > { %940 = vmatmul.msk.f32.gmra.mxu2 %vm382_vm0, %v529_v19  ;;  %944 = vmatmul.msk.f32.gmra.mxu3 %vm382_vm0, %v529_v19 }
  0xd2   : > { %933 = vmatmul.msk.f32.gmra.mxu0 %vm382_vm0, %v530_v21  ;;  %937 = vmatmul.msk.f32.gmra.mxu1 %vm382_vm0, %v530_v21 }
  0xd8   : > { %941 = vmatmul.msk.f32.gmra.mxu2 %vm382_vm0, %v530_v21  ;;  %945 = vmatmul.msk.f32.gmra.mxu3 %vm382_vm0, %v530_v21 }
 0x137   : > { %v584_v22 = vpop.f32.mrf.mxu0  ;;  %v613_v23 = vpop.f32.mrf.mxu1 }
 0x138   : > { %v585_v50 = vadd.f32 %v584_v22, %v538_v43  ;;  %v614_v51 = vadd.f32 %v613_v23, %v538_v43 }
 0x13a   : > { %v683_v54 = vmax.f32 %v585_v50, 0.0  ;;  %v684_v55 = vmax.f32 %v614_v51, 0.0 }
 0x13f   : > { %v587_v24 = vpop.f32.mrf.mxu0  ;;  %v616_v25 = vpop.f32.mrf.mxu1 }
 0x140   : > { %v588_v41 = vadd.f32 %v587_v24, %v543_v38  ;;  %v617_v42 = vadd.f32 %v616_v25, %v543_v38 }
 0x142   : > { %v687_v52 = vmax.f32 %v588_v41, 0.0  ;;  %v688_v53 = vmax.f32 %v617_v42, 0.0 }
 0x143   : > { %v642_v27 = vpop.f32.mrf.mxu2  ;;  %v671_v28 = vpop.f32.mrf.mxu3 }
 0x144   : > { %v643_v3 = vadd.f32 %v642_v27, %v538_v43  ;;  %v672_v4 = vadd.f32 %v671_v28, %v538_v43 }
 0x146   : > { %v685_v9 = vmax.f32 %v643_v3, 0.0  ;;  %v686_v10 = vmax.f32 %v672_v4, 0.0 }
 0x147   : > { %v590_v29 = vpop.f32.mrf.mxu0  ;;  %v619_v30 = vpop.f32.mrf.mxu1 }
 0x148   : > { %v591_v34 = vadd.f32 %v590_v29, %v548_v33  ;;  %v620_v35 = vadd.f32 %v619_v30, %v548_v33 }
 0x14a   : > { %v691_v46 = vmax.f32 %v591_v34, 0.0  ;;  %v692_v47 = vmax.f32 %v620_v35, 0.0 }
 0x14b   : > { %v645_v31 = vpop.f32.mrf.mxu2  ;;  %v674_v32 = vpop.f32.mrf.mxu3 }
 0x14c   : > { %v646_v63 = vadd.f32 %v645_v31, %v543_v38  ;;  %v675_v0 = vadd.f32 %v674_v32, %v543_v38 }
 0x14e   : > { %v689_v7 = vmax.f32 %v646_v63, 0.0  ;;  %v690_v8 = vmax.f32 %v675_v0, 0.0 }
 0x14f   : > { %v593_v36 = vpop.f32.mrf.mxu0  ;;  %v622_v37 = vpop.f32.mrf.mxu1 }
 0x150   : > { %v594_v39 = vadd.f32 %v593_v36, %v553_v26  ;;  %v623_v40 = vadd.f32 %v622_v37, %v553_v26 }
 0x152   : > { %v695_v44 = vmax.f32 %v594_v39, 0.0  ;;  %v696_v45 = vmax.f32 %v623_v40, 0.0 }
 0x153   : > { %v648_v48 = vpop.f32.mrf.mxu2  ;;  %v677_v49 = vpop.f32.mrf.mxu3 }
 0x154   : > { %721 = vmatpush.msra.mxu0 %v695_v44  ;;  %741 = vmatpush.msra.mxu1 %v696_v45  ;;  %v649_v59 = vadd.f32 %v648_v48, %v548_v33  ;;  %v678_v60 = vadd.f32 %v677_v49, %v548_v33 }
 0x156   : > { %722 = vmatpush.msra.mxu0 %v691_v46  ;;  %742 = vmatpush.msra.mxu1 %v692_v47  ;;  %v693_v5 = vmax.f32 %v649_v59, 0.0  ;;  %v694_v6 = vmax.f32 %v678_v60, 0.0 }
 0x158   : > { %723 = vmatpush.msra.mxu0 %v687_v52  ;;  %743 = vmatpush.msra.mxu1 %v688_v53 }
 0x15a   : > { %724 = vmatpush.msra.mxu0 %v683_v54  ;;  %744 = vmatpush.msra.mxu1 %v684_v55 }
 0x15b   : > { %v651_v57 = vpop.f32.mrf.mxu2  ;;  %v680_v58 = vpop.f32.mrf.mxu3  ;;  %946 = vmatmul.msk.f32.vlgmr.msra.gmra.mxu0 %vm382_vm0, %v699_v56  ;;  %947 = vmatmul.msk.f32.vlgmr.msra.gmra.mxu1 %vm382_vm0, %v699_v56 }
 0x15c   : > { %v652_v61 = vadd.f32 %v651_v57, %v553_v26  ;;  %v681_v62 = vadd.f32 %v680_v58, %v553_v26 }
 0x15e   : > { %v697_v1 = vmax.f32 %v652_v61, 0.0  ;;  %v698_v2 = vmax.f32 %v681_v62, 0.0 }
 0x160   : > { %761 = vmatpush.msra.mxu2 %v697_v1  ;;  %781 = vmatpush.msra.mxu3 %v698_v2 }
 0x162   : > { %762 = vmatpush.msra.mxu2 %v693_v5  ;;  %782 = vmatpush.msra.mxu3 %v694_v6 }
 0x164   : > { %763 = vmatpush.msra.mxu2 %v689_v7  ;;  %783 = vmatpush.msra.mxu3 %v690_v8 }
 0x166   : > { %764 = vmatpush.msra.mxu2 %v685_v9  ;;  %784 = vmatpush.msra.mxu3 %v686_v10 }
 0x167   : > { %948 = vmatmul.msk.f32.vlgmr.msra.gmra.mxu2 %vm382_vm0, %v699_v56  ;;  %949 = vmatmul.msk.f32.vlgmr.msra.gmra.mxu3 %vm382_vm0, %v699_v56 }
 0x1d8   : > { %v746_v11 = vpop.f32.mrf.mxu1  ;;  %v726_v14 = vpop.f32.mrf.mxu0 }
 0x1d9   : > { %v747_v13 = vadd.f32 %v746_v11, %v704_v12  ;;  %v727_v20 = vadd.f32 %v726_v14, %v704_v12 }
 0x1db   : > { %v793_v17 = vrot.slane %v747_v13, 6 }
 0x1dd   : > { %v797_v23 = vsel %vm796_vm1, %v727_v20, %v793_v17 }
 0x1ea   : > { %v766_v15 = vpop.f32.mrf.mxu2  ;;  %v786_v16 = vpop.f32.mrf.mxu3 }
 0x1eb   : > { %v767_v18 = vadd.f32 %v766_v15, %v704_v12  ;;  %v787_v19 = vadd.f32 %v786_v16, %v704_v12 }
 0x1ed   : > { %v794_v21 = vrot.slane %v767_v18, 4  ;;  %v795_v22 = vrot.slane %v787_v19, 2 }
 0x1ef   : > { %v799_v24 = vsel %vm798_vm2, %v794_v21, %v795_v22 }
 0x1f0   : > { %v801_v25 = vsel %vm800_vm3, %v797_v23, %v799_v24 }
 0x1f1   : > { %803 = vst [vmem:[%s336_s29] sm:$0xff] %v801_v25 }
 0x1f2 PF: > { %s17_s26 = sadd.s32 1, %s1005_s26   ;;  %s1175_s24 = smov %s1001_s25 }
 0x1f3   : > { %p14_p5 = scmp.ge.s32.totalorder %s17_s26, 4   ;;  %s1176_s25 = smov %s1178_s27 }
 0x1f5   :  { %16 = sbr.rel (!%p14_p5) target bundleno = 2 (0x2), region = 81 }

</bundles_post_ra>
